<compile_context>
chip_gen: v7x
topology: tpu7x:2x2x1
jax: 0.10.0
libtpu: 0.0.40
codegen_flags: <defaults>
</compile_context>

<pallas_src>
import functools

import jax
import jax.numpy as jnp
from jax.experimental import pallas as pl
from jax.experimental.pallas import tpu as pltpu


LANES = 128
SUBLANES = 8


def _focal_tversky_kernel(yp_ref, yt_ref, out_ref, acc_tp, acc_p1, acc_yt,
                          *, beta, gamma, n_chunks, hw, rows_per_chunk,
                          need_mask):
    c = pl.program_id(1)  # spatial-chunk (reduction) axis

    # Zero the per-batch-item elementwise accumulators on the first chunk.
    @pl.when(c == 0)
    def _():
        acc_tp[...] = jnp.zeros_like(acc_tp)
        acc_p1[...] = jnp.zeros_like(acc_p1)
        acc_yt[...] = jnp.zeros_like(acc_yt)

    x0 = yp_ref[0, 0].astype(jnp.float32)          # (rows, 128) class-0 logits
    x1 = yp_ref[0, 1].astype(jnp.float32)          # (rows, 128) class-1 logits

    # softmax(x)[class 1] over 2 classes == sigmoid(x1 - x0): 1 exp + 1 div.
    p1 = 1.0 / (1.0 + jnp.exp(x0 - x1))            # (rows, 128)

    if need_mask:
        # Zero out padded lanes so sum(p1) does not leak into fp.
        row_ids = jax.lax.broadcasted_iota(jnp.int32, (rows_per_chunk, LANES), 0)
        lane_ids = jax.lax.broadcasted_iota(jnp.int32, (rows_per_chunk, LANES), 1)
        pos = (c * rows_per_chunk + row_ids) * LANES + lane_ids
        p1 = jnp.where(pos < hw, p1, 0.0)

    yt = yt_ref[0].astype(jnp.float32)             # (rows, 128), zero-padded

    # Deferred reduction: pure VPU elementwise accumulation in the hot loop.
    acc_tp[...] += p1 * yt
    acc_p1[...] += p1
    acc_yt[...] += yt

    # Last chunk of this batch item: single cross-lane reduce + Tversky/focal.
    @pl.when(c == n_chunks - 1)
    def _():
        tp = jnp.sum(acc_tp[...], keepdims=True)   # (1, 1)
        sp = jnp.sum(acc_p1[...], keepdims=True)   # (1, 1) = sum(p1)
        st = jnp.sum(acc_yt[...], keepdims=True)   # (1, 1) = sum(yt)
        fn = st - tp                               # sum((1-p1)*yt)
        fp = sp - tp                               # sum(p1*(1-yt))
        ti = tp / (tp + beta * fn + (1.0 - beta) * fp)   # addone=False
        term = (1.0 - ti) ** gamma
        out_ref[...] = jnp.broadcast_to(term, out_ref.shape).astype(out_ref.dtype)


def focal_tversky_loss(y_pred, y_true, beta, gamma, *, max_rows_per_chunk=512):
    """y_pred: (B, 2, H, W) logits (NCHW); y_true: (B, H, W) binary mask."""
    B, C, H, W = y_pred.shape
    assert C == 2, "two_class_prob expects exactly 2 channels"
    HW = H * W

    rows = -(-HW // LANES)                                   # ceil(HW / 128)
    rows_per_chunk = min(max_rows_per_chunk,
                         ((rows + SUBLANES - 1) // SUBLANES) * SUBLANES)
    n_chunks = -(-rows // rows_per_chunk)
    rows_pad = n_chunks * rows_per_chunk
    hw_pad = rows_pad * LANES
    need_mask = hw_pad != HW

    # Pass dtypes through (no forced upcast); kernel casts to f32 internally.
    yp = y_pred.reshape(B, C, HW)
    if not jnp.issubdtype(yp.dtype, jnp.floating):
        yp = yp.astype(jnp.float32)
    yt = y_true.reshape(B, HW)
    if not jnp.issubdtype(yt.dtype, jnp.floating):
        yt = yt.astype(jnp.float32)

    if need_mask:
        yp = jnp.pad(yp, ((0, 0), (0, 0), (0, hw_pad - HW)))
        yt = jnp.pad(yt, ((0, 0), (0, hw_pad - HW)))

    # Lane-dense layout: last dim = 128 lanes, second-to-last = sublanes.
    yp = yp.reshape(B, C, rows_pad, LANES)
    yt = yt.reshape(B, rows_pad, LANES)

    kernel = functools.partial(
        _focal_tversky_kernel,
        beta=float(beta), gamma=float(gamma),
        n_chunks=n_chunks, hw=HW,
        rows_per_chunk=rows_per_chunk, need_mask=need_mask,
    )

    out = pl.pallas_call(
        kernel,
        out_shape=jax.ShapeDtypeStruct((B, SUBLANES, LANES), jnp.float32),
        grid_spec=pltpu.PrefetchScalarGridSpec(
            num_scalar_prefetch=0,
            grid=(B, n_chunks),
            in_specs=[
                pl.BlockSpec((1, C, rows_per_chunk, LANES),
                             lambda b, c: (b, 0, c, 0)),
                pl.BlockSpec((1, rows_per_chunk, LANES),
                             lambda b, c: (b, c, 0)),
            ],
            out_specs=pl.BlockSpec((1, SUBLANES, LANES),
                                   lambda b, c: (b, 0, 0)),
            scratch_shapes=[pltpu.VMEM((rows_per_chunk, LANES), jnp.float32)] * 3,
        ),
        compiler_params=pltpu.CompilerParams(
            # batch axis independent (megacore on v7x); chunk axis carries
            # the per-batch accumulators -> reduction axis, placed last.
            dimension_semantics=("parallel", "arbitrary"),
        ),
    )(yp, yt)

    # Mean of the per-batch focal terms.
    return jnp.mean(out[:, 0, 0])


def _reference_loss(y_pred, y_true, beta, gamma):
    # Pure-JAX reference matching the PyTorch module semantics.
    p = jax.nn.softmax(y_pred.astype(jnp.float32), axis=1)[:, 1, :, :]
    B = p.shape[0]
    p = p.reshape(B, -1)
    t = y_true.astype(jnp.float32).reshape(B, -1)
    tp = jnp.sum(p * t, axis=1)
    fn = jnp.sum((1.0 - p) * t, axis=1)
    fp = jnp.sum(p * (1.0 - t), axis=1)
    ti = tp / (tp + beta * fn + (1.0 - beta) * fp)
    return jnp.mean((1.0 - ti) ** gamma)


if __name__ == "__main__":
    key = jax.random.PRNGKey(0)
    k1, k2 = jax.random.split(key)

    B, C, H, W = 2, 2, 16, 16
    beta, gamma = 0.7, 0.75

    y_pred = jax.random.normal(k1, (B, C, H, W), dtype=jnp.float32)
    y_true = (jax.random.uniform(k2, (B, H, W)) > 0.5).astype(jnp.float32)

    loss = focal_tversky_loss(y_pred, y_true, beta, gamma)
    loss = jax.block_until_ready(loss)

    ref = _reference_loss(y_pred, y_true, beta, gamma)
    assert jnp.allclose(loss, ref, rtol=1e-5, atol=1e-6), (loss, ref)

    print("KERNEL_OK")
</pallas_src>

<mosaic_0001>
module attributes {stable_mosaic.version = 11 : i64} {
  func.func @_focal_tversky_kernel(%arg0: i32, %arg1: i32, %arg2: memref<1x2x8x128xf32, #tpu.memory_space<vmem>>, %arg3: memref<1x8x128xf32, #tpu.memory_space<vmem>>, %arg4: memref<1x8x128xf32, #tpu.memory_space<vmem>>, %arg5: memref<8x128xf32, #tpu.memory_space<vmem>>, %arg6: memref<8x128xf32, #tpu.memory_space<vmem>>, %arg7: memref<8x128xf32, #tpu.memory_space<vmem>>) attributes {dimension_semantics = [#tpu.dimension_semantics<parallel>, #tpu.dimension_semantics<arbitrary>], iteration_bounds = array<i64: 2, 1>, scalar_prefetch = 0 : i64, scratch_operands = 3 : i64, tpu.core_type = #tpu.core_type<tc>, window_params = [{transform_indices = @transform_0, window_bounds = array<i64: 1, 2, 8, 128>}, {transform_indices = @transform_1, window_bounds = array<i64: 1, 8, 128>}, {transform_indices = @transform_2, window_bounds = array<i64: 1, 8, 128>}]} {
    %c0_i32 = arith.constant 0 : i32
    %0 = arith.cmpi eq, %arg1, %c0_i32 : i32
    %1 = arith.extui %0 : i1 to i32
    %c0_i32_0 = arith.constant 0 : i32
    %2 = arith.cmpi ne, %1, %c0_i32_0 : i32
    scf.if %2 {
      %cst_26 = arith.constant 0.000000e+00 : f32
      %40 = vector.broadcast %cst_26 : f32 to vector<8x128xf32>
      %c0_27 = arith.constant 0 : index
      %c0_28 = arith.constant 0 : index
      %41 = vector.load %arg5[%c0_27, %c0_28] : memref<8x128xf32, #tpu.memory_space<vmem>>, vector<8x128xf32>
      tpu.vector_store %arg5[%c0_27, %c0_28], %40 {strides = array<i32>} : memref<8x128xf32, #tpu.memory_space<vmem>>, vector<8x128xf32>,
      %cst_29 = arith.constant 0.000000e+00 : f32
      %42 = vector.broadcast %cst_29 : f32 to vector<8x128xf32>
      %c0_30 = arith.constant 0 : index
      %c0_31 = arith.constant 0 : index
      %43 = vector.load %arg6[%c0_30, %c0_31] : memref<8x128xf32, #tpu.memory_space<vmem>>, vector<8x128xf32>
      tpu.vector_store %arg6[%c0_30, %c0_31], %42 {strides = array<i32>} : memref<8x128xf32, #tpu.memory_space<vmem>>, vector<8x128xf32>,
      %cst_32 = arith.constant 0.000000e+00 : f32
      %44 = vector.broadcast %cst_32 : f32 to vector<8x128xf32>
      %c0_33 = arith.constant 0 : index
      %c0_34 = arith.constant 0 : index
      %45 = vector.load %arg7[%c0_33, %c0_34] : memref<8x128xf32, #tpu.memory_space<vmem>>, vector<8x128xf32>
      tpu.vector_store %arg7[%c0_33, %c0_34], %44 {strides = array<i32>} : memref<8x128xf32, #tpu.memory_space<vmem>>, vector<8x128xf32>,
    } else {
    }
    %c0 = arith.constant 0 : index
    %c0_1 = arith.constant 0 : index
    %c0_2 = arith.constant 0 : index
    %c0_3 = arith.constant 0 : index
    %3 = vector.load %arg2[%c0, %c0_1, %c0_2, %c0_3] : memref<1x2x8x128xf32, #tpu.memory_space<vmem>>, vector<1x1x8x128xf32>
    %4 = vector.shape_cast %3 : vector<1x1x8x128xf32> to vector<8x128xf32>
    %c0_4 = arith.constant 0 : index
    %c1 = arith.constant 1 : index
    %c0_5 = arith.constant 0 : index
    %c0_6 = arith.constant 0 : index
    %5 = vector.load %arg2[%c0_4, %c1, %c0_5, %c0_6] : memref<1x2x8x128xf32, #tpu.memory_space<vmem>>, vector<1x1x8x128xf32>
    %6 = vector.shape_cast %5 : vector<1x1x8x128xf32> to vector<8x128xf32>
    %7 = arith.subf %4, %6 : vector<8x128xf32>
    %8 = math.exp %7 : vector<8x128xf32>
    %cst = arith.constant 1.000000e+00 : f32
    %9 = vector.broadcast %cst : f32 to vector<8x128xf32>
    %10 = arith.addf %9, %8 : vector<8x128xf32>
    %cst_7 = arith.constant 1.000000e+00 : f32
    %11 = vector.broadcast %cst_7 : f32 to vector<8x128xf32>
    %12 = arith.divf %11, %10 : vector<8x128xf32>
    %13 = tpu.iota {dimensions = array<i32: 0>} : vector<8x128xi32>
    %14 = tpu.iota {dimensions = array<i32: 1>} : vector<8x128xi32>
    %c8_i32 = arith.constant 8 : i32
    %15 = arith.muli %arg1, %c8_i32 : i32
    %16 = vector.broadcast %15 : i32 to vector<8x128xi32>
    %17 = arith.addi %16, %13 : vector<8x128xi32>
    %c128_i32 = arith.constant 128 : i32
    %18 = vector.broadcast %c128_i32 : i32 to vector<8x128xi32>
    %19 = arith.muli %17, %18 : vector<8x128xi32>
    %20 = arith.addi %19, %14 : vector<8x128xi32>
    %c256_i32 = arith.constant 256 : i32
    %21 = vector.broadcast %c256_i32 : i32 to vector<8x128xi32>
    %22 = arith.cmpi slt, %20, %21 : vector<8x128xi32>
    %cst_8 = arith.constant 0.000000e+00 : f32
    %23 = vector.broadcast %cst_8 : f32 to vector<8x128xf32>
    %24 = arith.select %22, %12, %23 : vector<8x128xi1>, vector<8x128xf32>
    %c0_9 = arith.constant 0 : index
    %c0_10 = arith.constant 0 : index
    %c0_11 = arith.constant 0 : index
    %25 = vector.load %arg3[%c0_9, %c0_10, %c0_11] : memref<1x8x128xf32, #tpu.memory_space<vmem>>, vector<1x8x128xf32>
    %26 = vector.shape_cast %25 : vector<1x8x128xf32> to vector<8x128xf32>
    %c0_12 = arith.constant 0 : index
    %c0_13 = arith.constant 0 : index
    %27 = vector.load %arg5[%c0_12, %c0_13] : memref<8x128xf32, #tpu.memory_space<vmem>>, vector<8x128xf32>
    %28 = arith.mulf %24, %26 : vector<8x128xf32>
    %29 = arith.addf %27, %28 : vector<8x128xf32>
    %c0_14 = arith.constant 0 : index
    %c0_15 = arith.constant 0 : index
    %30 = vector.load %arg5[%c0_14, %c0_15] : memref<8x128xf32, #tpu.memory_space<vmem>>, vector<8x128xf32>
    tpu.vector_store %arg5[%c0_14, %c0_15], %29 {strides = array<i32>} : memref<8x128xf32, #tpu.memory_space<vmem>>, vector<8x128xf32>,
    %c0_16 = arith.constant 0 : index
    %c0_17 = arith.constant 0 : index
    %31 = vector.load %arg6[%c0_16, %c0_17] : memref<8x128xf32, #tpu.memory_space<vmem>>, vector<8x128xf32>
    %32 = arith.addf %31, %24 : vector<8x128xf32>
    %c0_18 = arith.constant 0 : index
    %c0_19 = arith.constant 0 : index
    %33 = vector.load %arg6[%c0_18, %c0_19] : memref<8x128xf32, #tpu.memory_space<vmem>>, vector<8x128xf32>
    tpu.vector_store %arg6[%c0_18, %c0_19], %32 {strides = array<i32>} : memref<8x128xf32, #tpu.memory_space<vmem>>, vector<8x128xf32>,
    %c0_20 = arith.constant 0 : index
    %c0_21 = arith.constant 0 : index
    %34 = vector.load %arg7[%c0_20, %c0_21] : memref<8x128xf32, #tpu.memory_space<vmem>>, vector<8x128xf32>
    %35 = arith.addf %34, %26 : vector<8x128xf32>
    %c0_22 = arith.constant 0 : index
    %c0_23 = arith.constant 0 : index
    %36 = vector.load %arg7[%c0_22, %c0_23] : memref<8x128xf32, #tpu.memory_space<vmem>>, vector<8x128xf32>
    tpu.vector_store %arg7[%c0_22, %c0_23], %35 {strides = array<i32>} : memref<8x128xf32, #tpu.memory_space<vmem>>, vector<8x128xf32>,
    %c0_i32_24 = arith.constant 0 : i32
    %37 = arith.cmpi eq, %arg1, %c0_i32_24 : i32
    %38 = arith.extui %37 : i1 to i32
    %c0_i32_25 = arith.constant 0 : i32
    %39 = arith.cmpi ne, %38, %c0_i32_25 : i32
    scf.if %39 {
      %c0_26 = arith.constant 0 : index
      %c0_27 = arith.constant 0 : index
      %40 = vector.load %arg5[%c0_26, %c0_27] : memref<8x128xf32, #tpu.memory_space<vmem>>, vector<8x128xf32>
      %41 = vector.shape_cast %40 : vector<8x128xf32> to vector<1x8x128xf32>
      %cst_28 = arith.constant dense<0.000000e+00> : vector<1xf32>
      %42 = vector.multi_reduction <add>, %41, %cst_28 [1, 2] : vector<1x8x128xf32> to vector<1xf32>
      %43 = vector.shape_cast %42 : vector<1xf32> to vector<1x1x1xf32>
      %44 = vector.extract %43[0, 0, 0] : f32 from vector<1x1x1xf32>
      %45 = vector.broadcast %44 : f32 to vector<1x1xf32>
      %c0_29 = arith.constant 0 : index
      %c0_30 = arith.constant 0 : index
      %46 = vector.load %arg6[%c0_29, %c0_30] : memref<8x128xf32, #tpu.memory_space<vmem>>, vector<8x128xf32>
      %47 = vector.shape_cast %46 : vector<8x128xf32> to vector<1x8x128xf32>
      %cst_31 = arith.constant dense<0.000000e+00> : vector<1xf32>
      %48 = vector.multi_reduction <add>, %47, %cst_31 [1, 2] : vector<1x8x128xf32> to vector<1xf32>
      %49 = vector.shape_cast %48 : vector<1xf32> to vector<1x1x1xf32>
      %50 = vector.extract %49[0, 0, 0] : f32 from vector<1x1x1xf32>
      %51 = vector.broadcast %50 : f32 to vector<1x1xf32>
      %c0_32 = arith.constant 0 : index
      %c0_33 = arith.constant 0 : index
      %52 = vector.load %arg7[%c0_32, %c0_33] : memref<8x128xf32, #tpu.memory_space<vmem>>, vector<8x128xf32>
      %53 = vector.shape_cast %52 : vector<8x128xf32> to vector<1x8x128xf32>
      %cst_34 = arith.constant dense<0.000000e+00> : vector<1xf32>
      %54 = vector.multi_reduction <add>, %53, %cst_34 [1, 2] : vector<1x8x128xf32> to vector<1xf32>
      %55 = vector.shape_cast %54 : vector<1xf32> to vector<1x1x1xf32>
      %56 = vector.extract %55[0, 0, 0] : f32 from vector<1x1x1xf32>
      %57 = vector.broadcast %56 : f32 to vector<1x1xf32>
      %58 = arith.subf %57, %45 : vector<1x1xf32>
      %59 = arith.subf %51, %45 : vector<1x1xf32>
      %cst_35 = arith.constant 0.699999988 : f32
      %60 = vector.broadcast %cst_35 : f32 to vector<1x1xf32>
      %61 = arith.mulf %60, %58 : vector<1x1xf32>
      %62 = arith.addf %45, %61 : vector<1x1xf32>
      %cst_36 = arith.constant 3.000000e-01 : f32
      %63 = vector.broadcast %cst_36 : f32 to vector<1x1xf32>
      %64 = arith.mulf %63, %59 : vector<1x1xf32>
      %65 = arith.addf %62, %64 : vector<1x1xf32>
      %66 = arith.divf %45, %65 : vector<1x1xf32>
      %cst_37 = arith.constant 1.000000e+00 : f32
      %67 = vector.broadcast %cst_37 : f32 to vector<1x1xf32>
      %68 = arith.subf %67, %66 : vector<1x1xf32>
      %cst_38 = arith.constant 7.500000e-01 : f32
      %69 = vector.broadcast %cst_38 : f32 to vector<1x1xf32>
      %70 = math.powf %68, %69 : vector<1x1xf32>
      %71 = vector.shape_cast %70 : vector<1x1xf32> to vector<1x1x1xf32>
      %72 = vector.broadcast %71 : vector<1x1x1xf32> to vector<1x8x128xf32>
      %c0_39 = arith.constant 0 : index
      %c0_40 = arith.constant 0 : index
      %c0_41 = arith.constant 0 : index
      %73 = vector.load %arg4[%c0_39, %c0_40, %c0_41] : memref<1x8x128xf32, #tpu.memory_space<vmem>>, vector<1x8x128xf32>
      tpu.vector_store %arg4[%c0_39, %c0_40, %c0_41], %72 {strides = array<i32>} : memref<1x8x128xf32, #tpu.memory_space<vmem>>, vector<1x8x128xf32>,
    } else {
    }
    return
  }
  func.func @transform_0(%arg0: i32, %arg1: i32) -> (i32, i32, i32, i32) {
    %c0_i32 = arith.constant 0 : i32
    %c0_i32_0 = arith.constant 0 : i32
    %c0_i32_1 = arith.constant 0 : i32
    return %arg0, %c0_i32, %arg1, %c0_i32_0 : i32, i32, i32, i32
  }
  func.func @transform_1(%arg0: i32, %arg1: i32) -> (i32, i32, i32) {
    %c0_i32 = arith.constant 0 : i32
    %c0_i32_0 = arith.constant 0 : i32
    return %arg0, %arg1, %c0_i32 : i32, i32, i32
  }
  func.func @transform_2(%arg0: i32, %arg1: i32) -> (i32, i32, i32) {
    %c0_i32 = arith.constant 0 : i32
    %c0_i32_0 = arith.constant 0 : i32
    %c0_i32_1 = arith.constant 0 : i32
    return %arg0, %c0_i32, %c0_i32_0 : i32, i32, i32
  }
}

</mosaic_0001>

<bundles_post_ra>
// kernel: tpu_custom_call.1
= control target key start
LH: loop header
LB: loop body
LE: loop exit
PB: predicated region body
PF: predicated region fallthrough
CT: control target
= control target key end

     0   :  { %7 = vsyncpa [#allocation6], 0  ;;  %s927_s0 = inlined_call_operand.hbm [shape: f32[2,2,8,128], index: 0, kind: input, shape index: {}]   ;;  %s928_s1 = inlined_call_operand.hbm [shape: f32[2,8,128], index: 1, kind: input, shape index: {}]   ;;  %s929_s2 = inlined_call_operand.hbm [shape: f32[2,8,128], index: 2, kind: output, shape index: {}]  }
   0x1   :  { %9 = vsyncpa [#allocation6 + $0x1], 0 }
   0x2   :  { %10 = vsyncpa [#allocation9], 0 }
   0x3   :  { %12 = vsyncpa [#allocation9 + $0x1], 0 }
   0x4   :  { %13 = vsyncpa [#allocation7], 0 }
   0x5   :  { %15 = vsyncpa [#allocation7 + $0x1], 0  ;;  %s708_s9 = smov 0   ;;  %s710_s10 = smov 0  }
   0x6   :  { %s712_s11 = smov 0   ;;  %s714_s12 = smov 0  }
   0x7   :  { %s716_s13 = smov 0   ;;  %s718_s14 = smov 0  }
   0x8 LB: > { %s420_s15 = sadd.s32 4294967295, %s686_s14   ;;  %s421_s16 = sadd.s32 4294967294, %s686_s14   ;;  %s686_s14 = sphi %s718_s14, %s21_s14   ;;  %s682_s13 = sphi %s716_s13, %s948_s13   ;;  %s678_s12 = sphi %s714_s12, %s947_s12   ;;  %s674_s11 = sphi %s712_s11, %s946_s11   ;;  %s670_s10 = sphi %s710_s10, %s945_s10   ;;  %s666_s9 = sphi %s708_s9, %s944_s9  }
   0x9   : > { %s33_s17 = sadd.s32 1, %s682_s13  ;;  %s42_s18 = sadd.s32 1, %s674_s11 }
   0xa   : > { %p35_p0 = scmp.ge.s32.totalorder %s33_s17, 2  ;;  %p49_p1 = scmp.ne.s32.totalorder %s674_s11, %s670_s10 }
   0xb   : > { %p50_p2 = scmp.eq.s32.totalorder %s686_s14, 0  ;;  %p55_p3 = scmp.ne.s32.totalorder %s670_s10, %s666_s9 }
   0xc   : > { %s950_s17 = smov (%p35_p0, %s33_s17), 0  ;;  %p56_p5 = scmp.eq.s32.totalorder %s420_s15, 0 }
   0xd   : > { %p749_p4 = por %p50_p2, %p49_p1  ;;  %s37_s20 = ssub.s32 %s682_s13, %s950_s17 }
   0xe   : > { %p107_p6 = scmp.eq.s32.totalorder %s420_s15, 1  ;;  %p40_p7 = scmp.eq.s32.totalorder %s37_s20, 0 }
   0xf   : > { %p755_p8 = por %p56_p5, %p55_p3  ;;  %p113_p10 = scmp.eq.s32.totalorder %s421_s16, 1 }
  0x10   : > { %p759_p9 = por %p107_p6, %p49_p1  ;;  %p478_p13 = scmp.lt.s32.totalorder %s686_s14, 2 }
  0x11   : > { %s933_s21 = scalar_select %p755_p8, 1, 0 }
  0x12   : > { %s934_s22 = scalar_select %p759_p9, 1, 0 }
  0x13   : > { %s764_s23 = scalar_select %p40_p7, %s674_s11, %s42_s18  }
  0x14   : > { %p766_p11 = por %p113_p10, %p55_p3  ;;  %s773_s25 = sand.u32 1, %s674_s11  }
  0x15   : > { %s424_s26 = sshll.u32 %s773_s25, 4  ;;  %s438_s27 = sshll.u32 %s682_s13, 8 }
  0x16   : > { %s935_s24 = scalar_select %p766_p11, 1, 0 }
  0x17   : > { %s780_s30 = scalar_lea.hbm %s927_s0, %s438_s27  ;;  %s137_s3 = scalar_lea.vmem [#allocation5], %s424_s26 }
  0x18   : > { %s145_s4 = sshll.u32 %s137_s3, 4  ;;  %p786_p0 = pnand %p478_p13, %p749_p4  ;;  %s782_s4 = int_to_ptr.vmem [resolvable:$true] %s145_s4 }
  0x19   : > { %s134_s6 = scalar_lea.sflag [#allocation6], %s773_s25  ;;  %s540_s7 = scalar_lea.hbm %s780_s30, 256 }
  0x1a   : > { %p541_p2 = scmp.ne.s32.totalorder %s780_s30, %s540_s7  ;;  %p542_p3 = pneg %p786_p0 }
  0x1b   : > { %s545_s16 = scalar_lea.hbm %s927_s0, 512  ;;  %p546_p4 = scmp.lt.u32.totalorder %s780_s30, %s927_s0 }
  0x1c   : > { %p543_p5 = pnand %p542_p3, %p541_p2  ;;  %p547_p7 = scmp.lt.u32.totalorder %s545_s16, %s540_s7 }
  0x1d   : > { %p549_p13 = scmp.lt.u32.totalorder %s540_s7, %s780_s30 }
  0x1e   : > { %p544_p6 = pneg %p543_p5  ;;  %p548_p10 = por %p547_p7, %p546_p4 }
  0x20   : > { %p550_p12 = por %p549_p13, %p548_p10 }
  0x22   : > { %p551_p1 = pnand %p550_p12, %p544_p6 }
  0x24   : > { %554 = shalt.err (!%p551_p1)
}
  0x25   : > { %s555_s20 = scalar_lea.vmem %s782_s4, 256  ;;  %s688_s26 = smov [#allocation5]  }
  0x26   : > { %p556_p2 = scmp.ne.s32.totalorder %s782_s4, %s555_s20  ;;  %s560_s27 = sshll.u32 %s688_s26, 4  ;;  %s561_s27 = int_to_ptr.vmem [resolvable:$false] %s560_s27 }
  0x27   : > { %s562_s28 = scalar_lea.vmem %s561_s27, 512  ;;  %p563_p9 = scmp.lt.s32.totalorder %s782_s4, %s561_s27 }
  0x28   : > { %p558_p5 = pnand %p556_p2, %p542_p3  ;;  %p564_p4 = scmp.lt.s32.totalorder %s562_s28, %s555_s20 }
  0x2a   : > { %p559_p11 = pneg %p558_p5  ;;  %p565_p7 = por %p564_p4, %p563_p9 }
  0x2c   : > { %p566_p10 = pnand %p565_p7, %p559_p11 }
  0x2e   : > { %569 = shalt.err (!%p566_p10)
}
  0x2f   : > { %s689_s29 = smov 128   ;;  %s690_s3 = smov 8  }
  0x30   : > { %470 = dma.hbm_to_vmem [thread:$0]  (!%p786_p0), %s780_s30, 256, %s782_s4, %s134_s6, %s689_s29, %s689_s29, %s690_s3  }
  0x31   : > { %p172_p12 = scmp.lt.s32.totalorder %s686_s14, 3  ;;  %s427_s7 = sshll.u32 %s773_s25, 3 }
  0x32   : > { %s428_s8 = sshll.u32 %s682_s13, 7  ;;  %p937_p9 = scmp.ge.s32.totalorder %s686_s14, 1 }
  0x33   : > { %s831_s19 = scalar_lea.hbm %s928_s1, %s428_s8  ;;  %s159_s20 = scalar_lea.vmem [#allocation8], %s427_s7 }
  0x34   : > { %p824_p11 = pnand %p937_p9, %p172_p12  ;;  %s167_s26 = sshll.u32 %s159_s20, 4  ;;  %s168_s26 = int_to_ptr.vmem [resolvable:$true] %s167_s26 }
  0x35   : > { %s156_s30 = scalar_lea.sflag [#allocation9], %s773_s25  ;;  %s570_s4 = scalar_lea.hbm %s831_s19, 128 }
  0x36   : > { %s938_s15 = scalar_select %p824_p11, 1, 0 }
  0x37   : > { %p571_p1 = scmp.ne.s32.totalorder %s831_s19, %s570_s4  ;;  %s575_s28 = scalar_lea.hbm %s928_s1, 256 }
  0x38   : > { %p576_p2 = scmp.lt.u32.totalorder %s831_s19, %s928_s1  ;;  %p577_p5 = scmp.lt.u32.totalorder %s575_s28, %s570_s4 }
  0x39   : > { %p573_p6 = pnand %p571_p1, %p542_p3  ;;  %p579_p7 = scmp.lt.u32.totalorder %s570_s4, %s831_s19 }
  0x3a   : > { %p578_p4 = por %p577_p5, %p576_p2 }
  0x3b   : > { %p574_p13 = pneg %p573_p6 }
  0x3c   : > { %p580_p10 = por %p579_p7, %p578_p4 }
  0x3e   : > { %p581_p12 = pnand %p580_p10, %p574_p13 }
  0x40   : > { %584 = shalt.err (!%p581_p12)
}
  0x41   : > { %s585_s25 = scalar_lea.vmem %s168_s26, 128  ;;  %s691_s7 = smov [#allocation8]  }
  0x42   : > { %p586_p9 = scmp.ne.s32.totalorder %s168_s26, %s585_s25  ;;  %s590_s8 = sshll.u32 %s691_s7, 4  ;;  %s591_s8 = int_to_ptr.vmem [resolvable:$false] %s590_s8 }
  0x43   : > { %s592_s16 = scalar_lea.vmem %s591_s8, 256  ;;  %p593_p8 = scmp.lt.s32.totalorder %s168_s26, %s591_s8 }
  0x44   : > { %p588_p1 = pnand %p586_p9, %p542_p3  ;;  %p594_p11 = scmp.lt.s32.totalorder %s592_s16, %s585_s25 }
  0x46   : > { %p589_p6 = pneg %p588_p1  ;;  %p595_p2 = por %p594_p11, %p593_p8 }
  0x48   : > { %p596_p5 = pnand %p595_p2, %p589_p6 }
  0x4a   : > { %599 = shalt.err (!%p596_p5)
}
  0x4b   : > { %473 = dma.hbm_to_vmem [thread:$0]  (!%p786_p0), %s831_s19, 128, %s168_s26, %s156_s30  }
  0x4c   : > { %p939_p13 = scmp.ne.s32.totalorder %s938_s15, 0 }
  0x4d   : > { %s856_s18 = sand.u32 (!%p939_p13), 1, %s670_s10   ;;  %p940_p3 = scmp.ne.s32.totalorder (!%p939_p13), %s933_s21, 0 }
  0x4e   : > { %176 = sbr.rel (%p939_p13) target bundleno = 400 (0x190), region = 28  ;;  %s430_s20 = sshll.u32 (!%p939_p13), %s856_s18, 4 }
  0x4f   : > { %s179_s4 = scalar_lea.sflag (!%p939_p13), [#allocation6], %s856_s18  ;;  %s182_s6 = scalar_lea.vmem (!%p939_p13), [#allocation5], %s430_s20 }
  0x55   : > { %653 = dma.done.wait (%p940_p3), %s179_s4, 256  }
  0x56   : > { %655 = vsyncadd (%p940_p3), %s179_s4, 4294967040  ;;  %s431_s5 = sshll.u32 %s856_s18, 3  ;;  %s188_s15 = scalar_lea.sflag [#allocation9], %s856_s18 }
  0x57   : > { %s191_s19 = scalar_lea.vmem [#allocation8], %s431_s5 }
  0x58   : > { %657 = dma.done.wait (%p940_p3), %s188_s15, 128  }
  0x59   : > { %659 = vsyncadd (%p940_p3), %s188_s15, 4294967168  ;;  %v244_v0 = vld [vmem:[%s191_s19] sm:$0xff]  ;;  %v433_v2 = vld [vmem:[%s182_s6 + $0x8] sm:$0xff]  ;;  %v233_v5 = vlaneseq  ;;  %s435_s27 = sshll.u32 %s678_s12, 7  ;;  %s216_s28 = scalar_lea.vmem [#allocation10], %s431_s5 }
  0x5a   : > { %v224_v1 = vld [vmem:[%s182_s6] sm:$0xff]  ;;  %281 = vadd.xlane.f32.xlu1 %v244_v0  ;;  %s316_s29 = sshll.u32 %s216_s28, 4  ;;  %s878_s7 = scalar_lea.hbm %s929_s2, %s435_s27  ;;  %s880_s29 = int_to_ptr.vmem [resolvable:$true] %s316_s29 }
  0x5b   : > { %v227_v3 = vsub.f32 %v224_v1, %v433_v2  ;;  %v234_v6 = vshrl.u32 %v233_v5, 7  ;;  %v236_v9 = vand.u32 127, %v233_v5  ;;  %s303_s12 = scalar_lea.sflag [#allocation7], %s856_s18  ;;  %s600_s8 = scalar_lea.vmem %s880_s29, 128 }
  0x5c   : > { %p601_p8 = scmp.ne.s32.totalorder %s880_s29, %s600_s8  ;;  %p941_p0 = scmp.ne.s32.totalorder %s934_s22, 0 }
  0x5d   : > { %v228_v4 = vmul.f32 1.442695, %v227_v3  ;;  %v240_v10 = vmul.u32 128, %v234_v6  ;;  %s692_s16 = smov [#allocation10]  }
  0x5e   : > { %p602_p11 = pnand %p601_p8, %p941_p0  ;;  %s604_s20 = sshll.u32 %s692_s16, 4  ;;  %s605_s20 = int_to_ptr.vmem [resolvable:$false] %s604_s20 }
  0x5f   : > { %530 = vpow2.f32 %v228_v4  ;;  %v241_v11 = vadd.s32 %v240_v10, %v236_v9  ;;  %s606_s4 = scalar_lea.vmem %s605_s20, 256  ;;  %p607_p7 = scmp.lt.s32.totalorder %s880_s29, %s605_s20 }
  0x60   : > { %p603_p4 = pneg %p602_p11  ;;  %p608_p10 = scmp.lt.s32.totalorder %s606_s4, %s600_s8 }
  0x61   : > { %vm242_vm0 = vcmp.lt.s32.totalorder %v241_v11, 256 }
  0x62   : > { %p609_p12 = por %p608_p10, %p607_p7 }
  0x64   : > { %p610_p9 = pnand %p609_p12, %p603_p4 }
  0x69   : > { %v531_v7 = vpop.eup %530 }
  0x6a   : > { %v230_v8 = vadd.f32 1.0, %v531_v7 }
  0x6c   : > { %532 = vrcp.f32 %v230_v8 }
  0x76   : > { %v533_v12 = vpop.eup %532 }
  0x77   : > { %v243_v13 = vsel %vm242_vm0, %v533_v12, 0.0 }
  0x78   : > { %v246_v14 = vmul.f32 %v244_v0, %v243_v13 }
  0x7a   : > { %259 = vadd.xlane.f32.xlu0 %v246_v14 }
  0x7e   : > { %270 = vadd.xlane.f32.xlu0 %v243_v13 }
  0xe7   : > { %v282_v15 = vpop.xlane.xlu1 %281 }
  0xe8   : > { %v283_v16 = vrot.slane %v282_v15, 4 }
  0xea   : > { %v284_v17 = vadd.f32 %v283_v16, %v282_v15 }
  0xec   : > { %v285_v21 = vrot.slane %v284_v17, 2 }
  0xee   : > { %v286_v27 = vadd.f32 %v285_v21, %v284_v17 }
  0xf0   : > { %v287_v32 = vrot.slane %v286_v27, 1 }
  0xf2   : > { %v288_v35 = vadd.f32 %v287_v32, %v286_v27 }
 0x107   : > { %v260_v18 = vpop.xlane.xlu0 %259 }
 0x108   : > { %v261_v19 = vrot.slane %v260_v18, 4 }
 0x10a   : > { %v262_v20 = vadd.f32 %v261_v19, %v260_v18 }
 0x10b   : > { %v271_v22 = vpop.xlane.xlu0 %270 }
 0x10c   : > { %v263_v23 = vrot.slane %v262_v20, 2  ;;  %v272_v24 = vrot.slane %v271_v22, 4 }
 0x10e   : > { %v273_v25 = vadd.f32 %v272_v24, %v271_v22  ;;  %v264_v26 = vadd.f32 %v263_v23, %v262_v20 }
 0x110   : > { %v274_v28 = vrot.slane %v273_v25, 2  ;;  %v265_v29 = vrot.slane %v264_v26, 1 }
 0x112   : > { %v275_v30 = vadd.f32 %v274_v28, %v273_v25  ;;  %v266_v31 = vadd.f32 %v265_v29, %v264_v26 }
 0x114   : > { %439 = vpush %v266_v31  ;;  %v276_v33 = vrot.slane %v275_v30, 1 }
 0x116   : > { %v277_v34 = vadd.f32 %v276_v33, %v275_v30 }
 0x118   : > { %441 = vpush %v277_v34 }
 0x119   : > { %443 = vpush %v288_v35 }
 0x145   : > { %s440_s21 = spop %439 }
 0x146   : > { %v268_v37 = vstv %s440_s21 }
 0x149   : > { %s442_s26 = spop %441 }
 0x14a   : > { %v279_v36 = vstv %s442_s26  ;;  %s444_s30 = spop %443 }
 0x14b   : > { %v290_v38 = vstv %s444_s30  ;;  %v292_v39 = vsub.f32 %v279_v36, %v268_v37 }
 0x14c   : > { %v291_v40 = vsub.f32 %v290_v38, %v268_v37 }
 0x14d   : > { %v295_v42 = vmul.f32 0.3, %v292_v39 }
 0x14e   : > { %v293_v41 = vmul.f32 0.7, %v291_v40 }
 0x150   : > { %v294_v43 = vadd.f32 %v293_v41, %v268_v37 }
 0x152   : > { %v296_v44 = vadd.f32 %v295_v42, %v294_v43 }
 0x154   : > { %534 = vrcp.f32 %v296_v44 }
 0x15e   : > { %v535_v45 = vpop.eup %534 }
 0x15f   : > { %v298_v46 = vmul.f32 %v535_v45, %v268_v37 }
 0x161   : > { %v299_v47 = vsub.f32 1.0, %v298_v46 }
 0x163   : > { %536 = vrsqrt.f32 %v299_v47  ;;  %vm451_vm1 = vcmp.eq.f32.partialorder %v299_v47, inf  ;;  %v454_v50 = vand.u32 2147483648, %v299_v47  ;;  %vm445_vm2 = vcmp.eq.f32.partialorder %v299_v47, 0.0 }
 0x164   : > { %v447_v54 = vand.u32 2147483647, %v299_v47  ;;  %vm446_vm3 = vcmp.lt.f32.partialorder %v299_v47, 0.0 }
 0x166   : > { %vm448_vm4 = vcmp.eq.f32.partialorder %v447_v54, inf }
 0x16d   : > { %v537_v48 = vpop.eup %536 }
 0x16e   : > { %v450_v49 = vmul.f32 %v537_v48, %v299_v47 }
 0x170   : > { %v452_v51 = vsel %vm451_vm1, %v299_v47, %v450_v49 }
 0x171   : > { %v455_v52 = vsel %vm445_vm2, %v454_v50, %v452_v51 }
 0x172   : > { %538 = vrsqrt.f32 %v455_v52 }
 0x17c   : > { %v539_v53 = vpop.eup %538 }
 0x17d   : > { %v457_v55 = vmul.f32 %v539_v53, %v299_v47 }
 0x17f   : > { %v458_v56 = vsel %vm446_vm3, nan, %v457_v55 }
 0x180   : > { %v459_v57 = vsel %vm445_vm2, 0.0, %v458_v56 }
 0x181   : > { %v460_v58 = vsel %vm448_vm4, inf, %v459_v57 }
 0x182   : > { %301 = vst [vmem:[%s216_s28] sm:$0xff] %v460_v58 }
 0x183   : > { %613 = shalt.err (!%p610_p9)
}
 0x184   : > { %s614_s18 = scalar_lea.hbm %s878_s7, 128  ;;  %s618_s15 = scalar_lea.hbm %s929_s2, 256 }
 0x185   : > { %p615_p1 = scmp.ne.s32.totalorder %s878_s7, %s614_s18  ;;  %p619_p5 = scmp.lt.u32.totalorder %s878_s7, %s929_s2 }
 0x186   : > { %p620_p13 = scmp.lt.u32.totalorder %s618_s15, %s614_s18  ;;  %p622_p8 = scmp.lt.u32.totalorder %s614_s18, %s878_s7 }
 0x187   : > { %p616_p6 = pnand %p615_p1, %p941_p0 }
 0x188   : > { %p621_p3 = por %p620_p13, %p619_p5 }
 0x189   : > { %p617_p2 = pneg %p616_p6 }
 0x18a   : > { %p623_p11 = por %p622_p8, %p621_p3 }
 0x18c   : > { %p624_p4 = pnand %p623_p11, %p617_p2 }
 0x18e   : > { %627 = shalt.err (!%p624_p4)
}
 0x18f   : > { %465 = dma.vmem_to_hbm [thread:$0]  (%p941_p0), %s880_s29, 128, %s878_s7, %s303_s12  }
 0x190 PF: > { %s328_s26 = sand.u32 1, %s666_s9   ;;  %p942_p7 = scmp.ne.s32.totalorder %s935_s24, 0 }
 0x191   : > { %p943_p10 = scmp.ge.s32.totalorder %s686_s14, 2  ;;  %s329_s30 = scalar_lea.sflag [#allocation7], %s328_s26 }
 0x193   : > { %p475_p12 = pnand %p943_p10, %p942_p7 }
 0x195   : > { %661 = dma.done.wait (!%p475_p12), %s329_s30, 128  }
 0x196   : > { %663 = vsyncadd (!%p475_p12), %s329_s30, 4294967168  ;;  %s21_s14 = sadd.s32 1, %s686_s14   ;;  %s944_s9 = smov %s670_s10 }
 0x197   : > { %p18_p9 = scmp.ge.s32.totalorder %s21_s14, 4   ;;  %s945_s10 = smov %s674_s11 }
 0x198   : > { %s946_s11 = smov %s764_s23  ;;  %s947_s12 = smov %s682_s13 }
 0x199   : > { %s948_s13 = smov %s950_s17  ;;  %20 = sbr.rel (!%p18_p9) target bundleno = 8 (0x8), region = 95 }
 0x1a0   :  { %334 = vsyncpa [#allocation6], 1 }
 0x1a1   :  { %336 = vsyncpa [#allocation6 + $0x1], 1 }
 0x1a2   :  { %337 = vsyncpa [#allocation9], 1 }
 0x1a3   :  { %339 = vsyncpa [#allocation9 + $0x1], 1 }
 0x1a4   :  { %340 = vsyncpa [#allocation7], 1 }
 0x1a5   :  { %342 = vsyncpa [#allocation7 + $0x1], 1 }

</bundles_post_ra>
